<compile_context>
chip_gen: v5e
topology: v5e:2x2
jax: 0.10.0
libtpu: 0.0.40
codegen_flags: <defaults>
</compile_context>

<pallas_src>
import functools

import jax
import jax.numpy as jnp
from jax.experimental import pallas as pl
from jax.experimental.pallas import tpu as pltpu

LANE = 128                     # TPU lane width — pad all *output* feature dims to this
BATCH_ALIGN = 16               # covers bf16 (16,128) sublane packing (and f32's 8)
TM_CAP = 1024                  # batch-tile cap (f32 tile double-buffer @1024 ~6.3 MiB)
COMPUTE_DTYPE = jnp.bfloat16   # MXU-native matmul operand dtype on v5e/v6e/v7x


def _round_up(x, m):
    return ((x + m - 1) // m) * m


def _choose_tiling(batch):
    """Pick (tm, M_pad) with M_pad % tm == 0 and tm sublane/packing aligned.
    Uses exactly two tiles whenever the batch allows it so the "parallel" batch
    axis can shard across v7x's two TensorCores."""
    m = _round_up(max(batch, 1), BATCH_ALIGN)
    if m <= BATCH_ALIGN or m > 2 * TM_CAP:
        tm = min(TM_CAP, m)
        return tm, _round_up(m, tm)
    half = _round_up((m + 1) // 2, BATCH_ALIGN)
    return half, 2 * half


def _fused_mlp_kernel(x_ref, *refs, n_layers):
    """Whole MLP for one batch tile. Layer loop is unrolled at trace time;
    weights/biases are VMEM-resident for the whole grid (constant block index)."""
    o_ref = refs[-1]
    h = x_ref[...].astype(COMPUTE_DTYPE)            # (tm, 784) -> bf16 matmul operand
    for l in range(n_layers):
        w = refs[2 * l][...]                        # (K, N_pad) bf16, lane-dense
        b = refs[2 * l + 1][...]                    # (1, N_pad) f32, post-accumulation
        h = jnp.dot(h, w, preferred_element_type=jnp.float32) + b   # f32 accumulate
        if l != n_layers - 1:
            h = jnp.maximum(h, 0.0).astype(COMPUTE_DTYPE)           # ReLU, back to bf16
    o_ref[...] = h.astype(o_ref.dtype)


def fused_mlp_pallas(x2d, prepared_params, *, out_dtype=jnp.float32):
    """x2d: (B, 784) float array (any float dtype; bf16 avoids any cast cost).
    prepared_params: [(w (K, N_pad) bf16, b (1, N_pad) f32), ...] from prepare_params.
    Returns (M_pad, N_pad_last) padded logits."""
    B, K0 = x2d.shape
    n_layers = len(prepared_params)
    n_out_pad = prepared_params[-1][0].shape[1]
    assert prepared_params[0][0].shape[0] == K0, "first-layer K must match flattened input"

    tm, m_pad = _choose_tiling(B)
    assert m_pad % tm == 0 and tm % 8 == 0

    # Only the batch dim is padded (and only when needed); the feature dim stays
    # at 784 — no (M_pad, K_pad) HBM zero-copy of the activation stream.
    # TODO(synk): for large ragged batches, a masked partial last tile would avoid
    # even this row-pad copy.
    x_in = x2d
    if m_pad != B:
        x_in = jnp.zeros((m_pad, K0), x2d.dtype).at[:B, :].set(x2d)

    flat_args = [x_in]
    in_specs = [pl.BlockSpec((tm, K0), lambda i: (i, 0))]        # pipelined activation tile
    for (w, b) in prepared_params:
        kp, npad = w.shape
        flat_args.append(w)
        in_specs.append(pl.BlockSpec((kp, npad), lambda i: (0, 0),
                                     pipeline_mode=pl.Buffered(1)))  # resident, single-buffered
        flat_args.append(b)
        in_specs.append(pl.BlockSpec((1, npad), lambda i: (0, 0),
                                     pipeline_mode=pl.Buffered(1)))

    # Advisory cost estimate for XLA's scheduler.
    flops = 0
    bytes_accessed = (x_in.size * x_in.dtype.itemsize
                      + m_pad * n_out_pad * jnp.dtype(out_dtype).itemsize)
    for (w, b) in prepared_params:
        flops += 2 * m_pad * w.shape[0] * w.shape[1]
        bytes_accessed += w.size * w.dtype.itemsize + b.size * b.dtype.itemsize
    cost = pl.CostEstimate(flops=flops, transcendentals=0, bytes_accessed=bytes_accessed)

    # Allow XLA to fuse the producer of the activation input (row-pad / dtype cast)
    # into the pallas_call input stream; weights/biases are prepared once upfront.
    allow_fusion = [True] + [False] * (2 * n_layers)

    kernel = functools.partial(_fused_mlp_kernel, n_layers=n_layers)
    return pl.pallas_call(
        kernel,
        out_shape=jax.ShapeDtypeStruct((m_pad, n_out_pad), out_dtype),
        grid=(m_pad // tm,),
        in_specs=in_specs,
        out_specs=pl.BlockSpec((tm, n_out_pad), lambda i: (i, 0)),   # lane-dense (128) stores
        compiler_params=pltpu.CompilerParams(
            dimension_semantics=("parallel",),        # batch tiles shard across v7x's 2 TCs
            vmem_limit_bytes=32 * 1024 * 1024,        # explicit: v5e default is 16 MiB; safe on v7x
            allow_input_fusion=allow_fusion,
        ),
        cost_estimate=cost,
    )(*flat_args)


def init_width_model_params(key, layer_sizes, in_features=28 * 28, out_classes=10):
    """Deterministic init matching nn.Linear shapes, stored transposed as (in, out), f32."""
    params = []
    sizes = list(layer_sizes) + [out_classes]
    prev = in_features
    for size in sizes:
        key, kw, kb = jax.random.split(key, 3)
        bound = 1.0 / jnp.sqrt(prev)
        w = jax.random.uniform(kw, (prev, size), jnp.float32, -bound, bound)
        b = jax.random.uniform(kb, (1, size), jnp.float32, -bound, bound)
        params.append((w, b))
        prev = size
    return params


def prepare_params(params, in_features=28 * 28):
    """ONE-TIME (hoisted out of the forward path) padding + cast of the params:
      * output dim N padded to a lane multiple (128); K of layer l matches the
        padded N of layer l-1; the first layer keeps K = 784 (no K padding).
      * weights cast to bf16 (MXU operand), biases kept f32 (added after f32 accum).
    Zero-padded rows/lanes keep padded outputs exactly zero through bias-add+ReLU,
    so valid lanes are unaffected.
    TODO(synk): round N to 256 on v6e/v7x for genuinely wide hidden layers (2x256^2 MXU)."""
    prepared = []
    prev_pad = in_features
    for (w, b) in params:
        k, n = w.shape
        npad = _round_up(n, LANE)
        w_p = jnp.zeros((prev_pad, npad), COMPUTE_DTYPE).at[:k, :n].set(w.astype(COMPUTE_DTYPE))
        b_p = jnp.zeros((1, npad), jnp.float32).at[:, :n].set(b.astype(jnp.float32))
        prepared.append((w_p, b_p))
        prev_pad = npad
    return prepared


def width_model_forward(x_nchw, prepared_params, out_classes=10):
    """Forward: flatten -> hidden Linear+ReLU layers -> output Linear (single fused kernel)."""
    B = x_nchw.shape[0]
    x2d = x_nchw.reshape(B, -1)                     # nn.Flatten (layout-only JAX glue)
    logits_pad = fused_mlp_pallas(x2d, prepared_params)
    return logits_pad[:B, :out_classes]             # (B, 10) logits


if __name__ == "__main__":
    key = jax.random.PRNGKey(0)
    k_in, k_par = jax.random.split(key)

    # Small, MNIST-shaped example: batch=2, NCHW input (2, 1, 28, 28).
    x = jax.random.normal(k_in, (2, 1, 28, 28), dtype=jnp.float32)

    # Two hidden layers of widths [32, 64]; output layer -> 10 classes.
    layer_sizes = [32, 64]
    params = init_width_model_params(k_par, layer_sizes)
    prepared = prepare_params(params)               # padded + cast once, reused every call

    fwd = jax.jit(width_model_forward)
    logits = fwd(x, prepared)
    logits = jax.block_until_ready(logits)
    assert logits.shape == (2, 10)

    # Reference 1: identical math (bf16 operands, f32 accumulation) in pure JAX.
    h = x.reshape(2, -1).astype(jnp.bfloat16)
    for i, (w, b) in enumerate(params):
        z = jnp.dot(h, w.astype(jnp.bfloat16), preferred_element_type=jnp.float32) + b
        h = jnp.maximum(z, 0.0).astype(jnp.bfloat16) if i != len(params) - 1 else z
    ref_bf16 = z
    assert jnp.allclose(logits, ref_bf16, atol=2e-2, rtol=2e-2), (
        "max |diff| vs bf16 ref = %f" % float(jnp.max(jnp.abs(logits - ref_bf16))))

    # Reference 2: the original f32 PyTorch math (loose tolerance: bf16 matmul operands).
    h = x.reshape(2, -1)
    for i, (w, b) in enumerate(params):
        h = h @ w + b
        if i != len(params) - 1:
            h = jnp.maximum(h, 0.0)
    assert jnp.allclose(logits, h, atol=1e-1, rtol=1e-1), (
        "max |diff| vs f32 ref = %f" % float(jnp.max(jnp.abs(logits - h))))

    print("KERNEL_OK")
</pallas_src>

<mosaic_0001>
module attributes {stable_mosaic.version = 11 : i64} {
  func.func @_fused_mlp_kernel(%arg0: i32, %arg1: memref<16x784xf32, #tpu.memory_space<vmem>>, %arg2: memref<784x128xbf16, #tpu.memory_space<vmem>>, %arg3: memref<1x128xf32, #tpu.memory_space<vmem>>, %arg4: memref<128x128xbf16, #tpu.memory_space<vmem>>, %arg5: memref<1x128xf32, #tpu.memory_space<vmem>>, %arg6: memref<128x128xbf16, #tpu.memory_space<vmem>>, %arg7: memref<1x128xf32, #tpu.memory_space<vmem>>, %arg8: memref<16x128xf32, #tpu.memory_space<vmem>>) attributes {dimension_semantics = [#tpu.dimension_semantics<parallel>], iteration_bounds = array<i64: 1>, scalar_prefetch = 0 : i64, scratch_operands = 0 : i64, tpu.core_type = #tpu.core_type<tc>, window_params = [{transform_indices = @transform_0, window_bounds = array<i64: 16, 784>}, {pipeline_mode = #tpu.pipeline_mode<synchronous>, transform_indices = @transform_1, window_bounds = array<i64: 784, 128>}, {pipeline_mode = #tpu.pipeline_mode<synchronous>, transform_indices = @transform_2, window_bounds = array<i64: 1, 128>}, {pipeline_mode = #tpu.pipeline_mode<synchronous>, transform_indices = @transform_3, window_bounds = array<i64: 128, 128>}, {pipeline_mode = #tpu.pipeline_mode<synchronous>, transform_indices = @transform_4, window_bounds = array<i64: 1, 128>}, {pipeline_mode = #tpu.pipeline_mode<synchronous>, transform_indices = @transform_5, window_bounds = array<i64: 128, 128>}, {pipeline_mode = #tpu.pipeline_mode<synchronous>, transform_indices = @transform_6, window_bounds = array<i64: 1, 128>}, {transform_indices = @transform_7, window_bounds = array<i64: 16, 128>}]} {
    %c0 = arith.constant 0 : index
    %c0_0 = arith.constant 0 : index
    %0 = vector.load %arg1[%c0, %c0_0] : memref<16x784xf32, #tpu.memory_space<vmem>>, vector<16x784xf32>
    %1 = arith.truncf %0 : vector<16x784xf32> to vector<16x784xbf16>
    %c0_1 = arith.constant 0 : index
    %c0_2 = arith.constant 0 : index
    %2 = vector.load %arg2[%c0_1, %c0_2] : memref<784x128xbf16, #tpu.memory_space<vmem>>, vector<784x128xbf16>
    %c0_3 = arith.constant 0 : index
    %c0_4 = arith.constant 0 : index
    %3 = vector.load %arg3[%c0_3, %c0_4] : memref<1x128xf32, #tpu.memory_space<vmem>>, vector<1x128xf32>
    %cst = arith.constant dense<0.000000e+00> : vector<16x128xf32>
    %4 = tpu.matmul %1, %2, %cst {dimension_numbers = #tpu.dot_dimension_numbers<[1], [0], [0], [1], [0, 0, 1, 1], [], []>} : vector<16x784xbf16>, vector<784x128xbf16>, vector<16x128xf32> -> vector<16x128xf32>
    %5 = vector.broadcast %3 : vector<1x128xf32> to vector<16x128xf32>
    %6 = arith.addf %4, %5 : vector<16x128xf32>
    %cst_5 = arith.constant 0.000000e+00 : f32
    %7 = vector.broadcast %cst_5 : f32 to vector<16x128xf32>
    %8 = arith.maximumf %6, %7 : vector<16x128xf32>
    %9 = arith.truncf %8 : vector<16x128xf32> to vector<16x128xbf16>
    %c0_6 = arith.constant 0 : index
    %c0_7 = arith.constant 0 : index
    %10 = vector.load %arg4[%c0_6, %c0_7] : memref<128x128xbf16, #tpu.memory_space<vmem>>, vector<128x128xbf16>
    %c0_8 = arith.constant 0 : index
    %c0_9 = arith.constant 0 : index
    %11 = vector.load %arg5[%c0_8, %c0_9] : memref<1x128xf32, #tpu.memory_space<vmem>>, vector<1x128xf32>
    %cst_10 = arith.constant dense<0.000000e+00> : vector<16x128xf32>
    %12 = tpu.matmul %9, %10, %cst_10 {dimension_numbers = #tpu.dot_dimension_numbers<[1], [0], [0], [1], [0, 0, 1, 1], [], []>} : vector<16x128xbf16>, vector<128x128xbf16>, vector<16x128xf32> -> vector<16x128xf32>
    %13 = vector.broadcast %11 : vector<1x128xf32> to vector<16x128xf32>
    %14 = arith.addf %12, %13 : vector<16x128xf32>
    %cst_11 = arith.constant 0.000000e+00 : f32
    %15 = vector.broadcast %cst_11 : f32 to vector<16x128xf32>
    %16 = arith.maximumf %14, %15 : vector<16x128xf32>
    %17 = arith.truncf %16 : vector<16x128xf32> to vector<16x128xbf16>
    %c0_12 = arith.constant 0 : index
    %c0_13 = arith.constant 0 : index
    %18 = vector.load %arg6[%c0_12, %c0_13] : memref<128x128xbf16, #tpu.memory_space<vmem>>, vector<128x128xbf16>
    %c0_14 = arith.constant 0 : index
    %c0_15 = arith.constant 0 : index
    %19 = vector.load %arg7[%c0_14, %c0_15] : memref<1x128xf32, #tpu.memory_space<vmem>>, vector<1x128xf32>
    %cst_16 = arith.constant dense<0.000000e+00> : vector<16x128xf32>
    %20 = tpu.matmul %17, %18, %cst_16 {dimension_numbers = #tpu.dot_dimension_numbers<[1], [0], [0], [1], [0, 0, 1, 1], [], []>} : vector<16x128xbf16>, vector<128x128xbf16>, vector<16x128xf32> -> vector<16x128xf32>
    %21 = vector.broadcast %19 : vector<1x128xf32> to vector<16x128xf32>
    %22 = arith.addf %20, %21 : vector<16x128xf32>
    %c0_17 = arith.constant 0 : index
    %c0_18 = arith.constant 0 : index
    %23 = vector.load %arg8[%c0_17, %c0_18] : memref<16x128xf32, #tpu.memory_space<vmem>>, vector<16x128xf32>
    tpu.vector_store %arg8[%c0_17, %c0_18], %22 {strides = array<i32>} : memref<16x128xf32, #tpu.memory_space<vmem>>, vector<16x128xf32>,
    return
  }
  func.func @transform_0(%arg0: i32) -> (i32, i32) {
    %c0_i32 = arith.constant 0 : i32
    %c0_i32_0 = arith.constant 0 : i32
    return %arg0, %c0_i32 : i32, i32
  }
  func.func @transform_1(%arg0: i32) -> (i32, i32) {
    %c0_i32 = arith.constant 0 : i32
    %c0_i32_0 = arith.constant 0 : i32
    %c0_i32_1 = arith.constant 0 : i32
    return %c0_i32, %c0_i32_0 : i32, i32
  }
  func.func @transform_2(%arg0: i32) -> (i32, i32) {
    %c0_i32 = arith.constant 0 : i32
    %c0_i32_0 = arith.constant 0 : i32
    %c0_i32_1 = arith.constant 0 : i32
    return %c0_i32, %c0_i32_0 : i32, i32
  }
  func.func @transform_3(%arg0: i32) -> (i32, i32) {
    %c0_i32 = arith.constant 0 : i32
    %c0_i32_0 = arith.constant 0 : i32
    %c0_i32_1 = arith.constant 0 : i32
    return %c0_i32, %c0_i32_0 : i32, i32
  }
  func.func @transform_4(%arg0: i32) -> (i32, i32) {
    %c0_i32 = arith.constant 0 : i32
    %c0_i32_0 = arith.constant 0 : i32
    %c0_i32_1 = arith.constant 0 : i32
    return %c0_i32, %c0_i32_0 : i32, i32
  }
  func.func @transform_5(%arg0: i32) -> (i32, i32) {
    %c0_i32 = arith.constant 0 : i32
    %c0_i32_0 = arith.constant 0 : i32
    %c0_i32_1 = arith.constant 0 : i32
    return %c0_i32, %c0_i32_0 : i32, i32
  }
  func.func @transform_6(%arg0: i32) -> (i32, i32) {
    %c0_i32 = arith.constant 0 : i32
    %c0_i32_0 = arith.constant 0 : i32
    %c0_i32_1 = arith.constant 0 : i32
    return %c0_i32, %c0_i32_0 : i32, i32
  }
  func.func @transform_7(%arg0: i32) -> (i32, i32) {
    %c0_i32 = arith.constant 0 : i32
    %c0_i32_0 = arith.constant 0 : i32
    return %arg0, %c0_i32 : i32, i32
  }
}

</mosaic_0001>

<bundles_post_ra>
// kernel: width_model_forward.2
= control target key start
LH: loop header
LB: loop body
LE: loop exit
PB: predicated region body
PF: predicated region fallthrough
CT: control target
= control target key end

     0   :  { %s1415_s0 = inlined_call_operand.hbm [shape: bf16[784,128], index: 0, kind: input, shape index: {}]   ;;  %s1416_s1 = inlined_call_operand.vmem [shape: f32[1,128], index: 1, kind: input, shape index: {}]   ;;  %s1417_s2 = inlined_call_operand.vmem [shape: bf16[128,128], index: 2, kind: input, shape index: {}]   ;;  %s1418_s3 = inlined_call_operand.vmem [shape: f32[1,128], index: 3, kind: input, shape index: {}]   ;;  %s1419_s4 = inlined_call_operand.vmem [shape: bf16[128,128], index: 4, kind: input, shape index: {}]   ;;  %s1420_s5 = inlined_call_operand.vmem [shape: f32[1,128], index: 5, kind: input, shape index: {}]   ;;  %s1421_s6 = inlined_call_operand.vmem [shape: f32[2,784], index: 6, kind: input, shape index: {}]   ;;  %s1422_s7 = inlined_call_operand.<no memory space> [shape: f32[], index: 7, kind: input, shape index: {}]   ;;  %s1423_s8 = inlined_call_operand.vmem [shape: f32[16,128], index: 8, kind: output, shape index: {}]  }
   0x1   :  { %v1294_v0 = vstv %s1422_s7 }
   0x2   :  { %14 = vsyncpa [#allocation8], 0  ;;  %s21_s9 = sshll.u32 %s1415_s0, 4  ;;  %s1243_s10 = smov [#allocation7]   ;;  %s22_s9 = int_to_ptr.hbm [resolvable:$true] %s21_s9 }
   0x3   :  { %s23_s11 = sshll.u32 %s1243_s10, 4  ;;  %s1244_s12 = smov 64   ;;  %s24_s11 = int_to_ptr.vmem [resolvable:$true] %s23_s11 }
   0x4   :  { %s1245_s13 = smov 4  }
   0x5   :  { %29 = dma.hbm_to_vmem [thread:$0]  %s22_s9, 6272, %s24_s11, [#allocation8], %s1244_s12, %s1244_s12, %s1245_s13  }
   0x6   :  { %1241 = dma.done.wait [#allocation8], 6272  }
   0x7   :  { %1242 = vsyncadd [#allocation8], 4294961024  ;;  %v1153_v1 = vld [vmem:[#allocation7 + $0x38] sm:$0xff]  ;;  %v1152_v5 = vld [vmem:[#allocation7 + $0x30] sm:$0xff]  ;;  %v45_v21 = vlaneseq  ;;  %vm600_vm2 = vcmask 130048  }
   0x8   :  { %v1161_v2 = vld [vmem:[#allocation7 + $0x78] sm:$0xff]  ;;  %604 = vmatpush.bf16.msra.mxu0 %v1153_v1  ;;  %v1160_v6 = vld [vmem:[#allocation7 + $0x70] sm:$0xff]  ;;  %v1151_v9 = vld [vmem:[#allocation7 + $0x28] sm:$0xff] }
   0x9   :  { %v1169_v3 = vld [vmem:[#allocation7 + $0xb8] sm:$0xff]  ;;  %618 = vmatpush.bf16.msra.mxu1 %v1161_v2  ;;  %v1168_v7 = vld [vmem:[#allocation7 + $0xb0] sm:$0xff]  ;;  %v1159_v10 = vld [vmem:[#allocation7 + $0x68] sm:$0xff]  ;;  %v1299_v26 = vshrl.u32 %v45_v21, 7  ;;  %v146_v52 = vand.u32 127, %v45_v21 }
   0xa   :  { %v1177_v4 = vld [vmem:[#allocation7 + $0xf8] sm:$0xff]  ;;  %632 = vmatpush.bf16.msra.mxu2 %v1169_v3  ;;  %v1176_v8 = vld [vmem:[#allocation7 + $0xf0] sm:$0xff]  ;;  %v1167_v11 = vld [vmem:[#allocation7 + $0xa8] sm:$0xff] }
   0xb   :  { %646 = vmatpush.bf16.msra.mxu3 %v1177_v4  ;;  %v1175_v12 = vld [vmem:[#allocation7 + $0xe8] sm:$0xff]  ;;  %v1150_v13 = vld [vmem:[#allocation7 + $0x20] sm:$0xff]  ;;  %v1149_v17 = vld [vmem:[#allocation7 + $0x18] sm:$0xff]  ;;  %vm48_vm0 = vcmp.lt.s32.totalorder %v1299_v26, 2  ;;  %v147_v55 = vadd.s32 768, %v146_v52 }
   0xc   :  { %605 = vmatpush.bf16.msra.mxu0 %v1152_v5  ;;  %v1158_v14 = vld [vmem:[#allocation7 + $0x60] sm:$0xff]  ;;  %v1157_v18 = vld [vmem:[#allocation7 + $0x58] sm:$0xff]  ;;  %v1148_v22 = vld [vmem:[#allocation7 + $0x10] sm:$0xff] }
   0xd   :  { %619 = vmatpush.bf16.msra.mxu1 %v1160_v6  ;;  %v1166_v15 = vld [vmem:[#allocation7 + $0xa0] sm:$0xff]  ;;  %v1165_v19 = vld [vmem:[#allocation7 + $0x98] sm:$0xff]  ;;  %v1156_v23 = vld [vmem:[#allocation7 + $0x50] sm:$0xff]  ;;  %vm148_vm1 = vcmp.lt.s32.totalorder %v147_v55, 784 }
   0xe   :  { %633 = vmatpush.bf16.msra.mxu2 %v1168_v7  ;;  %v1174_v16 = vld [vmem:[#allocation7 + $0xe0] sm:$0xff]  ;;  %v1173_v20 = vld [vmem:[#allocation7 + $0xd8] sm:$0xff]  ;;  %v1164_v24 = vld [vmem:[#allocation7 + $0x90] sm:$0xff] }
   0xf   :  { %647 = vmatpush.bf16.msra.mxu3 %v1176_v8  ;;  %v1172_v25 = vld [vmem:[#allocation7 + $0xd0] sm:$0xff]  ;;  %v1147_v27 = vld [vmem:[#allocation7 + $0x8] sm:$0xff]  ;;  %v44_v31 = vld [vmem:[%s1421_s6] sm:$0x3] }
  0x10   :  { %606 = vmatpush.bf16.msra.mxu0 %v1151_v9  ;;  %v1155_v28 = vld [vmem:[#allocation7 + $0x48] sm:$0xff]  ;;  %v879_v32 = vld [vmem:[%s1421_s6 + $0x2] sm:$0x3]  ;;  %v880_v35 = vld [vmem:[%s1421_s6 + $0x4] sm:$0x3]  ;;  %v49_v36 = vsel %vm48_vm0, %v44_v31, %v1294_v0 }
  0x11   :  { %620 = vmatpush.bf16.msra.mxu1 %v1159_v10  ;;  %v1163_v29 = vld [vmem:[#allocation7 + $0x88] sm:$0xff]  ;;  %v1146_v33 = vld [vmem:[#allocation7] sm:$0xff]  ;;  %v64_v38 = vsel %vm48_vm0, %v879_v32, %v1294_v0  ;;  %v1185_v39 = vld [vmem:[#allocation7 + $0x138] sm:$0xff]  ;;  %v80_v43 = vsel %vm48_vm0, %v880_v35, %v1294_v0  ;;  %v197_v44 = vpack.c.bf16 %v1294_v0, %v49_v36 }
  0x12   :  { %634 = vmatpush.bf16.msra.mxu2 %v1167_v11  ;;  %v1171_v30 = vld [vmem:[#allocation7 + $0xc8] sm:$0xff]  ;;  %v1154_v34 = vld [vmem:[#allocation7 + $0x40] sm:$0xff]  ;;  %v1193_v40 = vld [vmem:[#allocation7 + $0x178] sm:$0xff]  ;;  %v198_v46 = vpack.c.bf16 %v1294_v0, %v64_v38  ;;  %v199_v50 = vpack.c.bf16 %v1294_v0, %v80_v43 }
  0x13   :  { %648 = vmatpush.bf16.msra.mxu3 %v1175_v12  ;;  %v881_v37 = vld [vmem:[%s1421_s6 + $0x6] sm:$0x3]  ;;  %v1184_v48 = vld [vmem:[#allocation7 + $0x130] sm:$0xff]  ;;  %v1183_v53 = vld [vmem:[#allocation7 + $0x128] sm:$0xff] }
  0x14   :  { %607 = vmatpush.bf16.msra.mxu0 %v1150_v13  ;;  %v1162_v41 = vld [vmem:[#allocation7 + $0x80] sm:$0xff]  ;;  %v96_v45 = vsel %vm48_vm0, %v881_v37, %v1294_v0  ;;  %v1192_v49 = vld [vmem:[#allocation7 + $0x170] sm:$0xff]  ;;  %v1191_v54 = vld [vmem:[#allocation7 + $0x168] sm:$0xff] }
  0x15   :  { %621 = vmatpush.bf16.msra.mxu1 %v1158_v14  ;;  %v1170_v42 = vld [vmem:[#allocation7 + $0xc0] sm:$0xff]  ;;  %v200_v51 = vpack.c.bf16 %v1294_v0, %v96_v45  ;;  %v884_v58 = vld [vmem:[%s1421_s6 + $0xc] sm:$0x3]  ;;  %v1181_v60 = vld [vmem:[#allocation7 + $0x118] sm:$0xff] }
  0x16   :  { %635 = vmatpush.bf16.msra.mxu2 %v1166_v15  ;;  %v1194_v47 = vld [vmem:[#allocation7 + $0x180] sm:$0xff]  ;;  %v144_v59 = vsel %vm48_vm0, %v884_v58, %v1294_v0  ;;  %v1189_v61 = vld [vmem:[#allocation7 + $0x158] sm:$0xff]  ;;  %v1180_v63 = vld [vmem:[#allocation7 + $0x110] sm:$0xff] }
  0x17   :  { %649 = vmatpush.bf16.msra.mxu3 %v1174_v16  ;;  %v1182_v56 = vld [vmem:[#allocation7 + $0x120] sm:$0xff]  ;;  %v149_v62 = vsel %vm148_vm1, %v144_v59, %v1294_v0  ;;  %v1188_v1 = vld [vmem:[#allocation7 + $0x150] sm:$0xff]  ;;  %v1179_v3 = vld [vmem:[#allocation7 + $0x108] sm:$0xff] }
  0x18   :  { %608 = vmatpush.bf16.msra.mxu0 %v1149_v17  ;;  %v1190_v57 = vld [vmem:[#allocation7 + $0x160] sm:$0xff]  ;;  %v203_v2 = vpack.c.bf16 %v1294_v0, %v149_v62  ;;  %v1187_v4 = vld [vmem:[#allocation7 + $0x148] sm:$0xff]  ;;  %v1202_v13 = vld [vmem:[%s1417_s2 + $0x38] sm:$0xff] }
  0x19   :  { %622 = vmatpush.bf16.msra.mxu1 %v1157_v18  ;;  %v882_v5 = vld [vmem:[%s1421_s6 + $0x8] sm:$0x3]  ;;  %v883_v6 = vld [vmem:[%s1421_s6 + $0xa] sm:$0x3]  ;;  %v1178_v7 = vld [vmem:[#allocation7 + $0x100] sm:$0xff] }
  0x1a   :  { %636 = vmatpush.bf16.msra.mxu2 %v1165_v19  ;;  %v1186_v8 = vld [vmem:[#allocation7 + $0x140] sm:$0xff]  ;;  %v112_v9 = vsel %vm48_vm0, %v882_v5, %v1294_v0  ;;  %v128_v10 = vsel %vm48_vm0, %v883_v6, %v1294_v0  ;;  %v1201_v14 = vld [vmem:[%s1417_s2 + $0x30] sm:$0xff]  ;;  %v1200_v15 = vld [vmem:[%s1417_s2 + $0x28] sm:$0xff] }
  0x1b   :  { %650 = vmatpush.bf16.msra.mxu3 %v1173_v20  ;;  %v201_v11 = vpack.c.bf16 %v1294_v0, %v112_v9  ;;  %v202_v12 = vpack.c.bf16 %v1294_v0, %v128_v10  ;;  %v1199_v0 = vld [vmem:[%s1417_s2 + $0x20] sm:$0xff]  ;;  %v1198_v16 = vld [vmem:[%s1417_s2 + $0x18] sm:$0xff]  ;;  %v1197_v17 = vld [vmem:[%s1417_s2 + $0x10] sm:$0xff] }
  0x1c   :  { %609 = vmatpush.bf16.msra.mxu0 %v1148_v22  ;;  %v1196_v18 = vld [vmem:[%s1417_s2 + $0x8] sm:$0xff]  ;;  %v1195_v22 = vld [vmem:[%s1417_s2] sm:$0xff]  ;;  %v1209_v26 = vld [vmem:[%s1419_s4 + $0x30] sm:$0xff] }
  0x1d   :  { %623 = vmatpush.bf16.msra.mxu1 %v1156_v23  ;;  %v1214_v23 = vld [vmem:[%s1416_s1] ss:$0 sm:$0xff]  ;;  %v1208_v31 = vld [vmem:[%s1419_s4 + $0x28] sm:$0xff] }
  0x1e   :  { %637 = vmatpush.bf16.msra.mxu2 %v1164_v24  ;;  %v1210_v24 = vld [vmem:[%s1419_s4 + $0x38] sm:$0xff]  ;;  %v1207_v35 = vld [vmem:[%s1419_s4 + $0x20] sm:$0xff]  ;;  %v1204_v58 = vld [vmem:[%s1419_s4 + $0x8] sm:$0xff] }
  0x1f   :  { %651 = vmatpush.bf16.msra.mxu3 %v1172_v25  ;;  %v1203_v59 = vld [vmem:[%s1419_s4] sm:$0xff] }
  0x20   :  { %610 = vmatpush.bf16.msra.mxu0 %v1147_v27  ;;  %v1216_v5 = vld [vmem:[%s1420_s5] ss:$0 sm:$0xff] }
  0x21   :  { %624 = vmatpush.bf16.msra.mxu1 %v1155_v28 }
  0x22   :  { %638 = vmatpush.bf16.msra.mxu2 %v1163_v29 }
  0x23   :  { %652 = vmatpush.bf16.msra.mxu3 %v1171_v30 }
  0x24   :  { %611 = vmatpush.bf16.msra.mxu0 %v1146_v33 }
  0x25   :  { %625 = vmatpush.bf16.msra.mxu1 %v1154_v34 }
  0x26   :  { %639 = vmatpush.bf16.msra.mxu2 %v1162_v41 }
  0x27   :  { %653 = vmatpush.bf16.msra.mxu3 %v1170_v42  ;;  %612 = vmatmul.bf16.vlgmr.msra.gmra.mxu0 %v197_v44 }
  0x28   :  { %660 = vmatpush.bf16.msrb.mxu0 %v1185_v39  ;;  %626 = vmatmul.bf16.vlgmr.msra.gmra.mxu1 %v198_v46 }
  0x29   :  { %674 = vmatpush.bf16.msrb.mxu1 %v1193_v40  ;;  %640 = vmatmul.bf16.vlgmr.msra.gmra.mxu2 %v199_v50 }
  0x2a   :  { %695 = vmatpush.bf16.msrb.mxu2 %v1194_v47  ;;  %654 = vmatmul.bf16.vlgmr.msra.gmra.mxu3 %v200_v51 }
  0x2b   :  { %773 = vmatpush.bf16.msrb.mxu3 %v1202_v13 }
  0x2c   :  { %661 = vmatpush.bf16.msrb.mxu0 %v1184_v48 }
  0x2d   :  { %675 = vmatpush.bf16.msrb.mxu1 %v1192_v49 }
  0x2e   :  { %858 = vmatpush.bf16.msra.mxu2 %v1210_v24 }
  0x2f   :  { %774 = vmatpush.bf16.msrb.mxu3 %v1201_v14 }
  0x30   :  { %662 = vmatpush.bf16.msrb.mxu0 %v1183_v53 }
  0x31   :  { %676 = vmatpush.bf16.msrb.mxu1 %v1191_v54 }
  0x32   :  { %859 = vmatpush.bf16.msra.mxu2 %v1209_v26 }
  0x33   :  { %775 = vmatpush.bf16.msrb.mxu3 %v1200_v15 }
  0x34   :  { %663 = vmatpush.bf16.msrb.mxu0 %v1182_v56  ;;  %v1206_v56 = vld [vmem:[%s1419_s4 + $0x18] sm:$0xff] }
  0x35   :  { %677 = vmatpush.bf16.msrb.mxu1 %v1190_v57  ;;  %v1205_v57 = vld [vmem:[%s1419_s4 + $0x10] sm:$0xff] }
  0x36   :  { %860 = vmatpush.bf16.msra.mxu2 %v1208_v31 }
  0x37   :  { %776 = vmatpush.bf16.msrb.mxu3 %v1199_v0 }
  0x38   :  { %664 = vmatpush.bf16.msrb.mxu0 %v1181_v60 }
  0x39   :  { %678 = vmatpush.bf16.msrb.mxu1 %v1189_v61  ;;  %1081 = vmatmul.msk.bf16.vlgmr.msrb.gmra.mxu2 %vm600_vm2, %v203_v2  ;;  %v1215_v61 = vld [vmem:[%s1418_s3] ss:$0 sm:$0xff] }
  0x3a   :  { %861 = vmatpush.bf16.msra.mxu2 %v1207_v35 }
  0x3b   :  { %777 = vmatpush.bf16.msrb.mxu3 %v1198_v16 }
  0x3c   :  { %665 = vmatpush.bf16.msrb.mxu0 %v1180_v63 }
  0x3d   :  { %679 = vmatpush.bf16.msrb.mxu1 %v1188_v1 }
  0x3e   :  { %862 = vmatpush.bf16.msra.mxu2 %v1206_v56 }
  0x3f   :  { %778 = vmatpush.bf16.msrb.mxu3 %v1197_v17 }
  0x40   :  { %666 = vmatpush.bf16.msrb.mxu0 %v1179_v3 }
  0x41   :  { %680 = vmatpush.bf16.msrb.mxu1 %v1187_v4 }
  0x42   :  { %863 = vmatpush.bf16.msra.mxu2 %v1205_v57 }
  0x43   :  { %779 = vmatpush.bf16.msrb.mxu3 %v1196_v18 }
  0x44   :  { %667 = vmatpush.bf16.msrb.mxu0 %v1178_v7 }
  0x45   :  { %681 = vmatpush.bf16.msrb.mxu1 %v1186_v8 }
  0x46   :  { %864 = vmatpush.bf16.msra.mxu2 %v1204_v58 }
  0x47   :  { %668 = vmatmul.bf16.vlgmr.msrb.gmra.mxu0 %v201_v11  ;;  %780 = vmatpush.bf16.msrb.mxu3 %v1195_v22 }
  0x48   :  { %682 = vmatmul.bf16.vlgmr.msrb.gmra.mxu1 %v202_v12 }
  0x4a   :  { %865 = vmatpush.bf16.msra.mxu2 %v1203_v59 }
  0xa4   :  { %v613_v19 = vpop.f32.mrf.mxu0 }
  0xa5   :  { %v627_v20 = vpop.f32.mrf.mxu1  ;;  %v614_v25 = vadd.f32 %v1214_v23, %v613_v19 }
  0xa7   :  { %v628_v30 = vadd.f32 %v627_v20, %v614_v25 }
  0xac   :  { %v641_v21 = vpop.f32.mrf.mxu2  ;;  %v615_v27 = vpop.f32.mrf.mxu0 }
  0xad   :  { %v629_v28 = vpop.f32.mrf.mxu1  ;;  %v655_v32 = vpop.f32.mrf.mxu3  ;;  %v616_v33 = vadd.f32 %v1214_v23, %v615_v27  ;;  %v642_v34 = vadd.f32 %v641_v21, %v628_v30 }
  0xaf   :  { %v630_v36 = vadd.f32 %v629_v28, %v616_v33  ;;  %v656_v39 = vadd.f32 %v655_v32, %v642_v34 }
  0xb4   :  { %v643_v29 = vpop.f32.mrf.mxu2 }
  0xb5   :  { %v644_v41 = vadd.f32 %v643_v29, %v630_v36  ;;  %v657_v43 = vpop.f32.mrf.mxu3 }
  0xb7   :  { %v658_v44 = vadd.f32 %v657_v43, %v644_v41 }
  0xbc   :  { %v697_v40 = vpop.f32.mrf.mxu2 }
  0xc4   :  { %v669_v37 = vpop.f32.mrf.mxu0  ;;  %v699_v51 = vpop.f32.mrf.mxu2 }
  0xc5   :  { %v683_v38 = vpop.f32.mrf.mxu1  ;;  %v670_v42 = vadd.f32 %v669_v37, %v656_v39 }
  0xc7   :  { %v684_v45 = vadd.f32 %v683_v38, %v670_v42 }
  0xc9   :  { %v698_v49 = vadd.f32 %v697_v40, %v684_v45 }
  0xcb   :  { %v702_v53 = vmax.f32 %v698_v49, 0.0 }
  0xcc   :  { %v671_v46 = vpop.f32.mrf.mxu0 }
  0xcd   :  { %v672_v47 = vadd.f32 %v671_v46, %v658_v44  ;;  %v685_v48 = vpop.f32.mrf.mxu1 }
  0xcf   :  { %v686_v50 = vadd.f32 %v685_v48, %v672_v47 }
  0xd1   :  { %v700_v52 = vadd.f32 %v699_v51, %v686_v50 }
  0xd3   :  { %v703_v54 = vmax.f32 %v700_v52, 0.0 }
  0xd5   :  { %v704_v55 = vpack.c.bf16 %v703_v54, %v702_v53 }
  0xd7   :  { %781 = vmatmul.bf16.vlgmr.msrb.gmra.mxu3 %v704_v55 }
 0x15a   :  { %v782_v60 = vpop.f32.mrf.mxu3 }
 0x15b   :  { %v783_v62 = vadd.f32 %v1215_v61, %v782_v60 }
 0x15d   :  { %v787_v2 = vmax.f32 %v783_v62, 0.0 }
 0x162   :  { %v784_v63 = vpop.f32.mrf.mxu3 }
 0x163   :  { %v785_v1 = vadd.f32 %v1215_v61, %v784_v63 }
 0x165   :  { %v788_v3 = vmax.f32 %v785_v1, 0.0 }
 0x167   :  { %v789_v4 = vpack.c.bf16 %v788_v3, %v787_v2 }
 0x169   :  { %866 = vmatmul.bf16.vlgmr.msra.gmra.mxu2 %v789_v4 }
 0x1ec   :  { %v867_v6 = vpop.f32.mrf.mxu2 }
 0x1ed   :  { %v868_v7 = vadd.f32 %v1216_v5, %v867_v6 }
 0x1ef   :  { %872 = vst [vmem:[%s1423_s8] sm:$0xff] %v868_v7 }
 0x1f4   :  { %v869_v8 = vpop.f32.mrf.mxu2 }
 0x1f5   :  { %v870_v9 = vadd.f32 %v1216_v5, %v869_v8 }
 0x1f7   :  { %873 = vst [vmem:[%s1423_s8 + $0x8] sm:$0xff] %v870_v9 }
 0x1f8   :  { %878 = vsyncpa [#allocation8], 1 }

</bundles_post_ra>
